<compile_context>
chip_gen: v7x
topology: tpu7x:2x2x1
jax: 0.10.0
libtpu: 0.0.40
codegen_flags: <defaults>
</compile_context>

<pallas_src>
import numpy as np
import jax
import jax.numpy as jnp
from jax import lax
from jax.experimental import pallas as pl
from jax.experimental.pallas import tpu as pltpu

_EPS = 1e-8            # F.cosine_similarity default eps (clamps ||a||*||b||)
_EPS2 = _EPS * _EPS
_SIM_THRESHOLD = 0.3   # memory-activation threshold
_NOISE_SCALE = 0.1

_DOT_LAST = (((1,), (1,)), ((), ()))   # contract last dims of both operands
_DOT_STD = (((1,), (0,)), ((), ()))    # standard (1,M)x(M,D) matmul


def _prologue_kernel(x_ref, mem_ref, sims_ref, add_ref):
    """One-shot hoisted math: everything that does not touch the noise stream.

    Produces sims (1,M) = cos(x, mem_a) and add (M,M) with
    add[a,i] = s_ai + mean_x_ai + mean_m_ai  (the per-row scalar of K'/W).
    """
    x = x_ref[...]                       # (1, D)
    mem = mem_ref[...]                   # (M, D)
    M, D = mem.shape

    ones_row = jnp.ones((1, D), jnp.float32)
    msq = mem * mem

    # tiny lane reductions
    nsq_x = jnp.sum(x * x, axis=-1, keepdims=True)            # (1,1)
    sum_x = jnp.sum(x, axis=-1, keepdims=True)                 # (1,1)
    nsq_col = jnp.sum(msq, axis=-1, keepdims=True)             # (M,1)  ||mem_a||^2

    # lane-dense contractions, computed ONCE; memory-row index i lives on lanes
    gram = lax.dot_general(mem, mem, _DOT_LAST,
                           preferred_element_type=jnp.float32)      # (M,M) mem_a.mem_i
    dotx_row = lax.dot_general(x, mem, _DOT_LAST,
                               preferred_element_type=jnp.float32)  # (1,M) x.mem_i
    sum_row = lax.dot_general(ones_row, mem, _DOT_LAST,
                              preferred_element_type=jnp.float32)   # (1,M) sum(mem_i)
    nsq_row = lax.dot_general(ones_row, msq, _DOT_LAST,
                              preferred_element_type=jnp.float32)   # (1,M) ||mem_i||^2

    # cos(x, mem_i): sims row and the activation set (rsqrt on clamped squares)
    cos_x_row = dotx_row * lax.rsqrt(jnp.maximum(nsq_x * nsq_row, _EPS2))   # (1,M)
    active_row = (cos_x_row > _SIM_THRESHOLD).astype(jnp.float32)            # (1,M)
    n_act = jnp.sum(active_row, axis=-1, keepdims=True)                      # (1,1)
    inv_nact = 1.0 / jnp.maximum(n_act, 1.0)

    # A-mean folded into one weighted memory vector: v = sum_{a' in A} mem_a'/||mem_a'||
    inv_nm_row = lax.rsqrt(jnp.maximum(nsq_row, _EPS2))                      # (1,M)
    w_row = active_row * inv_nm_row                                           # (1,M)
    v = lax.dot_general(w_row, mem, _DOT_STD,
                        preferred_element_type=jnp.float32)                  # (1,D)
    q = jnp.sum(v, axis=-1, keepdims=True)                                    # (1,1)
    p_row = lax.dot_general(v, mem, _DOT_LAST,
                            preferred_element_type=jnp.float32)              # (1,M) mem_i.v

    # per-(a,i) scalars: gating memory a on sublanes, memory row i on lanes
    cos_mm = gram * lax.rsqrt(jnp.maximum(nsq_col * nsq_row, _EPS2))         # cos(mem_i, mem_a)
    s = cos_mm + cos_x_row                                                     # (M,M)
    # K'[a,i] = mem_i + s  ->  ||K'||^2 = ||mem_i||^2 + 2 s sum(mem_i) + D s^2
    nk2 = nsq_row + 2.0 * s * sum_row + float(D) * s * s
    nk2 = jnp.maximum(nk2, 0.0)                                                # FP-cancellation guard
    mean_x = (dotx_row + s * sum_x) * lax.rsqrt(jnp.maximum(nk2 * nsq_x, _EPS2))
    mean_m = (p_row + s * q) * lax.rsqrt(jnp.maximum(nk2, _EPS2)) * inv_nact

    sims_ref[...] = cos_x_row
    add_ref[...] = s + mean_x + mean_m


def _stream_kernel(mem_ref, noise_ref, scale_ref, bias_ref, o1_ref):
    """Pure-elementwise HBM-bound epilogue over a block of gating memories.

    o1[a,i,:] = gate[a] * (mem[i,:] + add[a,i] + 0.1*noise[a,i,:])
              = scale[a,i] * (mem[i,:] + 0.1*noise[a,i,:]) + bias[a,i]
    """
    mem = mem_ref[...]                                  # (M, D) resident
    o1_ref[...] = (scale_ref[...] * (mem[None, :, :]
                                     + _NOISE_SCALE * noise_ref[...])
                   + bias_ref[...])


def _pick_a_block(M, row_bytes, target_bytes=1 << 20):
    """Largest divisor of M whose (a_blk*M, D) streamed block stays <= target."""
    a_blk = M
    while a_blk > 1 and a_blk * row_bytes > target_bytes:
        a_blk -= 1
        while M % a_blk:
            a_blk -= 1
    return a_blk


def layer1_forward(x, memories, noise):
    """HECF noisy-memory activation core.

    x:        (1, D) float32 tokenized input row
    memories: (M, D) float32 memory-bank embeddings
    noise:    (M*M, D) float32 pre-sampled N(0,1) noise
    returns:  (o1_dense (M*M, D), sims (1, M))
    """
    B, D = x.shape
    assert B == 1, "the `sim > 0.3` gate in the PyTorch forward assumes a single x row"
    M = memories.shape[0]

    # ---- one-shot prologue (all hoisted math, sims written once) -----------
    sims, add = pl.pallas_call(
        _prologue_kernel,
        out_shape=(jax.ShapeDtypeStruct((1, M), jnp.float32),
                   jax.ShapeDtypeStruct((M, M), jnp.float32)),
    )(x, memories)

    # per-a gate (1.0 iff cos(x, mem_a) > threshold); tiny wrapper-side layout work
    gate = (sims[0] > _SIM_THRESHOLD).astype(jnp.float32)            # (M,)
    scale3 = jnp.broadcast_to(gate.reshape(M, 1, 1), (M, M, 1))       # gate per (a,i)
    bias3 = scale3 * add.reshape(M, M, 1)                             # gate * add
    noise3 = noise.reshape(M, M, D)

    # ---- streaming epilogue: batched gating memories per grid step ---------
    row_bytes = M * D * 4
    a_blk = _pick_a_block(M, row_bytes)           # == M at the test size -> grid=(1,)
    block_bytes = a_blk * row_bytes
    vmem_limit = int(min(max(4 * block_bytes + 2 * M * D * 4 + (2 << 20), 16 << 20),
                         60 << 20))

    o1_3 = pl.pallas_call(
        _stream_kernel,
        out_shape=jax.ShapeDtypeStruct((M, M, D), jnp.float32),
        grid=(M // a_blk,),
        in_specs=[
            pl.BlockSpec((M, D), lambda g: (0, 0)),             # memory bank resident
            pl.BlockSpec((a_blk, M, D), lambda g: (g, 0, 0)),   # noise rows for this a block
            pl.BlockSpec((a_blk, M, 1), lambda g: (g, 0, 0)),   # gate scale per (a,i)
            pl.BlockSpec((a_blk, M, 1), lambda g: (g, 0, 0)),   # gate*add per (a,i)
        ],
        out_specs=pl.BlockSpec((a_blk, M, D), lambda g: (g, 0, 0)),
        compiler_params=pltpu.CompilerParams(
            dimension_semantics=("parallel",),      # disjoint output blocks per step
            vmem_limit_bytes=vmem_limit),
    )(memories, noise3, scale3, bias3)

    return o1_3.reshape(M * M, D), sims


def _layer5_kernel(scen_ref, out_ref):
    # Layer5.forward: O_5 = [scenario for scenario, score in O_4[:num_selected]]
    # -> copy the first num_selected scenario rows (scores are not used).
    out_ref[...] = scen_ref[0:out_ref.shape[0], :]


def layer5_forward(scenarios, num_selected=3):
    """Layer5 surface-level scenario selection on scenario-embedding rows."""
    n, d = scenarios.shape
    k = min(num_selected, n)
    return pl.pallas_call(
        _layer5_kernel,
        out_shape=jax.ShapeDtypeStruct((k, d), scenarios.dtype),
    )(scenarios)


def _reference(x, memories, noise):
    """Pure numpy mirror of the PyTorch loops (dense / zero-masked layout)."""
    xv = x[0]
    M, D = memories.shape

    def cos(a, b):
        return float(np.dot(a, b) / max(np.linalg.norm(a) * np.linalg.norm(b), _EPS))

    sims = np.array([cos(xv, memories[a]) for a in range(M)], np.float32)
    a_idx = [a for a in range(M) if sims[a] > _SIM_THRESHOLD]
    out = np.zeros((M * M, D), np.float32)
    for a in range(M):
        if sims[a] <= _SIM_THRESHOLD:
            continue
        for i in range(M):
            kp = memories[i] + cos(memories[i], memories[a]) + cos(memories[i], xv)
            mean_x = cos(kp, xv)  # mean over the single x row
            mean_m = float(np.mean([cos(kp, memories[ap]) for ap in a_idx]))
            w = kp + mean_x + mean_m
            out[a * M + i] = w + _NOISE_SCALE * noise[a * M + i]
    return out, sims


if __name__ == "__main__":
    key = jax.random.PRNGKey(0)
    kx, kcorr, kmem, knoise, kfb = jax.random.split(key, 5)

    B, D, M = 1, 128, 8
    x = jax.random.normal(kx, (B, D), dtype=jnp.float32)
    # first M//2 memories strongly correlated with x (cos > 0.3 -> activated),
    # the rest independent noise (cos ~ 0 -> filtered out by the gate)
    mem_hot = x + 0.3 * jax.random.normal(kcorr, (M // 2, D), dtype=jnp.float32)
    mem_cold = jax.random.normal(kmem, (M // 2, D), dtype=jnp.float32)
    memories = jnp.concatenate([mem_hot, mem_cold], axis=0)
    noise = jax.random.normal(knoise, (M * M * B, D), dtype=jnp.float32)

    o1_dense, sims = layer1_forward(x, memories, noise)
    o1_dense = jax.block_until_ready(o1_dense)
    sims = jax.block_until_ready(sims)

    n_active = int(jnp.sum(sims[0] > _SIM_THRESHOLD))
    if n_active == 0:
        # PyTorch empty-memory branch: W = [] -> O_1 = 0.1 * randn (trivial, plain JAX)
        o1 = _NOISE_SCALE * jax.random.normal(kfb, (B, D), dtype=jnp.float32)
    else:
        o1 = o1_dense

    # correctness check against a numpy mirror of the PyTorch loops
    ref_o1, ref_sims = _reference(np.asarray(x), np.asarray(memories), np.asarray(noise))
    assert np.allclose(np.asarray(sims)[0], ref_sims, rtol=1e-2, atol=1e-2)
    if n_active > 0:
        assert np.allclose(np.asarray(o1_dense), ref_o1, rtol=1e-2, atol=1e-2)

    # Layer5: select the first num_selected "scenarios" (embedding rows stand in
    # for the scenario strings of O_4).
    scenarios = o1_dense[:M, :]
    selected = jax.block_until_ready(layer5_forward(scenarios, num_selected=3))
    assert np.allclose(np.asarray(selected), np.asarray(scenarios)[:3])

    jax.block_until_ready(o1)
    print("KERNEL_OK")
</pallas_src>

<mosaic_0001>
module attributes {stable_mosaic.version = 11 : i64} {
  func.func @_prologue_kernel(%arg0: memref<1x128xf32, #tpu.memory_space<vmem>>, %arg1: memref<8x128xf32, #tpu.memory_space<vmem>>, %arg2: memref<1x8xf32, #tpu.memory_space<vmem>>, %arg3: memref<8x8xf32, #tpu.memory_space<vmem>>) attributes {dimension_semantics = [], scalar_prefetch = 0 : i64, scratch_operands = 0 : i64, tpu.core_type = #tpu.core_type<tc>} {
    %c0 = arith.constant 0 : index
    %c0_0 = arith.constant 0 : index
    %0 = vector.load %arg0[%c0, %c0_0] : memref<1x128xf32, #tpu.memory_space<vmem>>, vector<1x128xf32>
    %c0_1 = arith.constant 0 : index
    %c0_2 = arith.constant 0 : index
    %1 = vector.load %arg1[%c0_1, %c0_2] : memref<8x128xf32, #tpu.memory_space<vmem>>, vector<8x128xf32>
    %cst = arith.constant 1.000000e+00 : f32
    %2 = vector.broadcast %cst : f32 to vector<1x128xf32>
    %3 = arith.mulf %1, %1 : vector<8x128xf32>
    %4 = arith.mulf %0, %0 : vector<1x128xf32>
    %cst_3 = arith.constant dense<0.000000e+00> : vector<1xf32>
    %5 = vector.multi_reduction <add>, %4, %cst_3 [1] : vector<1x128xf32> to vector<1xf32>
    %6 = vector.shape_cast %5 : vector<1xf32> to vector<1x1xf32>
    %cst_4 = arith.constant dense<0.000000e+00> : vector<1xf32>
    %7 = vector.multi_reduction <add>, %0, %cst_4 [1] : vector<1x128xf32> to vector<1xf32>
    %8 = vector.shape_cast %7 : vector<1xf32> to vector<1x1xf32>
    %cst_5 = arith.constant dense<0.000000e+00> : vector<8xf32>
    %9 = vector.multi_reduction <add>, %3, %cst_5 [1] : vector<8x128xf32> to vector<8xf32>
    %10 = vector.shape_cast %9 : vector<8xf32> to vector<8x1xf32>
    %cst_6 = arith.constant dense<0.000000e+00> : vector<8x8xf32>
    %11 = tpu.matmul %1, %1, %cst_6 {dimension_numbers = #tpu.dot_dimension_numbers<[1], [1], [0], [0], [0, 0, 1, 0], [], []>} : vector<8x128xf32>, vector<8x128xf32>, vector<8x8xf32> -> vector<8x8xf32>
    %cst_7 = arith.constant dense<0.000000e+00> : vector<1x8xf32>
    %12 = tpu.matmul %0, %1, %cst_7 {dimension_numbers = #tpu.dot_dimension_numbers<[1], [1], [0], [0], [0, 0, 1, 0], [], []>} : vector<1x128xf32>, vector<8x128xf32>, vector<1x8xf32> -> vector<1x8xf32>
    %cst_8 = arith.constant dense<0.000000e+00> : vector<1x8xf32>
    %13 = tpu.matmul %2, %1, %cst_8 {dimension_numbers = #tpu.dot_dimension_numbers<[1], [1], [0], [0], [0, 0, 1, 0], [], []>} : vector<1x128xf32>, vector<8x128xf32>, vector<1x8xf32> -> vector<1x8xf32>
    %cst_9 = arith.constant dense<0.000000e+00> : vector<1x8xf32>
    %14 = tpu.matmul %2, %3, %cst_9 {dimension_numbers = #tpu.dot_dimension_numbers<[1], [1], [0], [0], [0, 0, 1, 0], [], []>} : vector<1x128xf32>, vector<8x128xf32>, vector<1x8xf32> -> vector<1x8xf32>
    %15 = vector.broadcast %6 : vector<1x1xf32> to vector<1x8xf32>
    %16 = arith.mulf %15, %14 : vector<1x8xf32>
    %cst_10 = arith.constant 1.000000e-16 : f32
    %17 = vector.broadcast %cst_10 : f32 to vector<1x8xf32>
    %18 = arith.maximumf %16, %17 : vector<1x8xf32>
    %19 = math.rsqrt %18 : vector<1x8xf32>
    %20 = arith.mulf %12, %19 : vector<1x8xf32>
    %cst_11 = arith.constant 3.000000e-01 : f32
    %21 = vector.broadcast %cst_11 : f32 to vector<1x8xf32>
    %22 = arith.cmpf ogt, %20, %21 : vector<1x8xf32>
    %23 = arith.extui %22 : vector<1x8xi1> to vector<1x8xi32>
    %24 = arith.sitofp %23 : vector<1x8xi32> to vector<1x8xf32>
    %cst_12 = arith.constant dense<0.000000e+00> : vector<1xf32>
    %25 = vector.multi_reduction <add>, %24, %cst_12 [1] : vector<1x8xf32> to vector<1xf32>
    %26 = vector.shape_cast %25 : vector<1xf32> to vector<1x1xf32>
    %cst_13 = arith.constant 1.000000e+00 : f32
    %27 = vector.broadcast %cst_13 : f32 to vector<1x1xf32>
    %28 = arith.maximumf %26, %27 : vector<1x1xf32>
    %cst_14 = arith.constant 1.000000e+00 : f32
    %29 = vector.broadcast %cst_14 : f32 to vector<1x1xf32>
    %30 = arith.divf %29, %28 : vector<1x1xf32>
    %cst_15 = arith.constant 1.000000e-16 : f32
    %31 = vector.broadcast %cst_15 : f32 to vector<1x8xf32>
    %32 = arith.maximumf %14, %31 : vector<1x8xf32>
    %33 = math.rsqrt %32 : vector<1x8xf32>
    %34 = arith.mulf %24, %33 : vector<1x8xf32>
    %cst_16 = arith.constant dense<0.000000e+00> : vector<1x128xf32>
    %35 = tpu.matmul %34, %1, %cst_16 {dimension_numbers = #tpu.dot_dimension_numbers<[1], [0], [0], [1], [0, 0, 1, 1], [], []>} : vector<1x8xf32>, vector<8x128xf32>, vector<1x128xf32> -> vector<1x128xf32>
    %cst_17 = arith.constant dense<0.000000e+00> : vector<1xf32>
    %36 = vector.multi_reduction <add>, %35, %cst_17 [1] : vector<1x128xf32> to vector<1xf32>
    %37 = vector.shape_cast %36 : vector<1xf32> to vector<1x1xf32>
    %cst_18 = arith.constant dense<0.000000e+00> : vector<1x8xf32>
    %38 = tpu.matmul %35, %1, %cst_18 {dimension_numbers = #tpu.dot_dimension_numbers<[1], [1], [0], [0], [0, 0, 1, 0], [], []>} : vector<1x128xf32>, vector<8x128xf32>, vector<1x8xf32> -> vector<1x8xf32>
    %39 = vector.broadcast %10 : vector<8x1xf32> to vector<8x8xf32>
    %40 = vector.broadcast %14 : vector<1x8xf32> to vector<8x8xf32>
    %41 = arith.mulf %39, %40 : vector<8x8xf32>
    %cst_19 = arith.constant 1.000000e-16 : f32
    %42 = vector.broadcast %cst_19 : f32 to vector<8x8xf32>
    %43 = arith.maximumf %41, %42 : vector<8x8xf32>
    %44 = math.rsqrt %43 : vector<8x8xf32>
    %45 = arith.mulf %11, %44 : vector<8x8xf32>
    %46 = vector.broadcast %20 : vector<1x8xf32> to vector<8x8xf32>
    %47 = arith.addf %45, %46 : vector<8x8xf32>
    %cst_20 = arith.constant 2.000000e+00 : f32
    %48 = vector.broadcast %cst_20 : f32 to vector<8x8xf32>
    %49 = arith.mulf %48, %47 : vector<8x8xf32>
    %50 = vector.broadcast %13 : vector<1x8xf32> to vector<8x8xf32>
    %51 = arith.mulf %49, %50 : vector<8x8xf32>
    %52 = vector.broadcast %14 : vector<1x8xf32> to vector<8x8xf32>
    %53 = arith.addf %52, %51 : vector<8x8xf32>
    %cst_21 = arith.constant 1.280000e+02 : f32
    %54 = vector.broadcast %cst_21 : f32 to vector<8x8xf32>
    %55 = arith.mulf %54, %47 : vector<8x8xf32>
    %56 = arith.mulf %55, %47 : vector<8x8xf32>
    %57 = arith.addf %53, %56 : vector<8x8xf32>
    %cst_22 = arith.constant 0.000000e+00 : f32
    %58 = vector.broadcast %cst_22 : f32 to vector<8x8xf32>
    %59 = arith.maximumf %57, %58 : vector<8x8xf32>
    %60 = vector.broadcast %8 : vector<1x1xf32> to vector<8x8xf32>
    %61 = arith.mulf %47, %60 : vector<8x8xf32>
    %62 = vector.broadcast %12 : vector<1x8xf32> to vector<8x8xf32>
    %63 = arith.addf %62, %61 : vector<8x8xf32>
    %64 = vector.broadcast %6 : vector<1x1xf32> to vector<8x8xf32>
    %65 = arith.mulf %59, %64 : vector<8x8xf32>
    %cst_23 = arith.constant 1.000000e-16 : f32
    %66 = vector.broadcast %cst_23 : f32 to vector<8x8xf32>
    %67 = arith.maximumf %65, %66 : vector<8x8xf32>
    %68 = math.rsqrt %67 : vector<8x8xf32>
    %69 = arith.mulf %63, %68 : vector<8x8xf32>
    %70 = vector.broadcast %37 : vector<1x1xf32> to vector<8x8xf32>
    %71 = arith.mulf %47, %70 : vector<8x8xf32>
    %72 = vector.broadcast %38 : vector<1x8xf32> to vector<8x8xf32>
    %73 = arith.addf %72, %71 : vector<8x8xf32>
    %cst_24 = arith.constant 1.000000e-16 : f32
    %74 = vector.broadcast %cst_24 : f32 to vector<8x8xf32>
    %75 = arith.maximumf %59, %74 : vector<8x8xf32>
    %76 = math.rsqrt %75 : vector<8x8xf32>
    %77 = arith.mulf %73, %76 : vector<8x8xf32>
    %78 = vector.broadcast %30 : vector<1x1xf32> to vector<8x8xf32>
    %79 = arith.mulf %77, %78 : vector<8x8xf32>
    %c0_25 = arith.constant 0 : index
    %c0_26 = arith.constant 0 : index
    %80 = vector.load %arg2[%c0_25, %c0_26] : memref<1x8xf32, #tpu.memory_space<vmem>>, vector<1x8xf32>
    tpu.vector_store %arg2[%c0_25, %c0_26], %20 {strides = array<i32>} : memref<1x8xf32, #tpu.memory_space<vmem>>, vector<1x8xf32>,
    %81 = arith.addf %47, %69 : vector<8x8xf32>
    %82 = arith.addf %81, %79 : vector<8x8xf32>
    %c0_27 = arith.constant 0 : index
    %c0_28 = arith.constant 0 : index
    %83 = vector.load %arg3[%c0_27, %c0_28] : memref<8x8xf32, #tpu.memory_space<vmem>>, vector<8x8xf32>
    tpu.vector_store %arg3[%c0_27, %c0_28], %82 {strides = array<i32>} : memref<8x8xf32, #tpu.memory_space<vmem>>, vector<8x8xf32>,
    return
  }
}

</mosaic_0001>

<bundles_post_ra>
// kernel: tpu_custom_call.1
= control target key start
LH: loop header
LB: loop body
LE: loop exit
PB: predicated region body
PF: predicated region fallthrough
CT: control target
= control target key end

     0   :  { %9 = vsyncpa [#allocation3], 0  ;;  %s865_s0 = inlined_call_operand.hbm [shape: f32[1,128], index: 0, kind: input, shape index: {}]   ;;  %s866_s1 = inlined_call_operand.hbm [shape: f32[8,128], index: 1, kind: input, shape index: {}]   ;;  %s867_s2 = inlined_call_operand.hbm [shape: f32[1,8], index: 2, kind: output, shape index: {0}]   ;;  %s868_s3 = inlined_call_operand.hbm [shape: f32[8,8], index: 3, kind: output, shape index: {1}]  }
   0x1   :  { %10 = vsyncpa [#allocation6], 0 }
   0x2   :  { %11 = vsyncpa [#allocation4], 0 }
   0x3   :  { %12 = vsyncpa [#allocation9], 0  ;;  %s749_s12 = smov [#allocation2]   ;;  %s750_s14 = smov [#allocation5]  }
   0x4   :  { %s19_s13 = sshll.u32 %s749_s12, 4  ;;  %s29_s15 = sshll.u32 %s750_s14, 4  ;;  %s20_s13 = int_to_ptr.vmem [resolvable:$true] %s19_s13  ;;  %s30_s15 = int_to_ptr.vmem [resolvable:$true] %s29_s15 }
   0x5   :  { %s653_s18 = scalar_lea.hbm %s865_s0, 16 }
   0x6   :  { %p654_p0 = scmp.ne.s32.totalorder %s865_s0, %s653_s18  ;;  %p657_p1 = scmp.lt.u32.totalorder %s653_s18, %s865_s0 }
   0x8   :  { %p659_p2 = pnand %p657_p1, %p654_p0 }
   0xa   :  { %662 = shalt.err (!%p659_p2)
}
   0xb   :  { %s663_s23 = scalar_lea.vmem %s20_s13, 16  ;;  %s667_s24 = scalar_lea.vmem %s20_s13, 32 }
   0xc   :  { %p664_p3 = scmp.ne.s32.totalorder %s20_s13, %s663_s23  ;;  %p668_p4 = scmp.lt.s32.totalorder %s20_s13, %s20_s13 }
   0xd   :  { %p669_p5 = scmp.lt.s32.totalorder %s667_s24, %s663_s23 }
   0xf   :  { %p670_p6 = por %p669_p5, %p668_p4 }
  0x11   :  { %p671_p7 = pnand %p670_p6, %p664_p3 }
  0x13   :  { %674 = shalt.err (!%p671_p7)
}
  0x14   :  { %22 = dma.hbm_to_vmem [thread:$0]  %s865_s0, 16, %s20_s13, [#allocation3]  }
  0x15   :  { %s675_s29 = scalar_lea.hbm %s866_s1, 128 }
  0x16   :  { %p676_p8 = scmp.ne.s32.totalorder %s866_s1, %s675_s29  ;;  %p679_p9 = scmp.lt.u32.totalorder %s675_s29, %s866_s1 }
  0x18   :  { %p681_p10 = pnand %p679_p9, %p676_p8 }
  0x1a   :  { %684 = shalt.err (!%p681_p10)
}
  0x1b   :  { %s685_s7 = scalar_lea.vmem %s30_s15, 128  ;;  %p690_p12 = scmp.lt.s32.totalorder %s30_s15, %s30_s15 }
  0x1c   :  { %p686_p11 = scmp.ne.s32.totalorder %s30_s15, %s685_s7  ;;  %p691_p13 = scmp.lt.s32.totalorder %s685_s7, %s685_s7 }
  0x1e   :  { %p692_p0 = por %p691_p13, %p690_p12 }
  0x20   :  { %p693_p1 = pnand %p692_p0, %p686_p11 }
  0x22   :  { %696 = shalt.err (!%p693_p1)
}
  0x23   :  { %32 = dma.hbm_to_vmem [thread:$0]  %s866_s1, 128, %s30_s15, [#allocation6]  }
  0x24   :  { %741 = dma.done.wait [#allocation3], 16  }
  0x25   :  { %742 = vsyncadd [#allocation3], 4294967280 }
  0x26   :  { %743 = dma.done.wait [#allocation6], 128  }
  0x27   :  { %744 = vsyncadd [#allocation6], 4294967168  ;;  %v751_v0 = vmov 0.0   ;;  %vm752_vm0 = vmmov 0   ;;  %v40_v1 = vld [vmem:[#allocation5] sm:$0xff]  ;;  %vm43_vm1 = vcmask 1040384   ;;  %v496_v7 = vlaneseq }
  0x28   :  { %609 = vmatprep.subr.mxu1 %v751_v0  ;;  %611 = vmatprep.mubr.msk.f32.mxu1 %vm752_vm0, %v751_v0  ;;  %v806_v2 = vld [vmem:[#allocation2] sm:$0x1]  ;;  %v41_v3 = vmul.f32 %v40_v1, %v40_v1  ;;  %v753_v6 = vmov 1.0   ;;  %vm339_vm2 = vcmask 57344   ;;  %vm349_vm4 = vcmask 64512   ;;  %s754_s1 = smov [#allocation7]  }
  0x29   :  { %604 = vmatprep.subr.mxu0 %v751_v0  ;;  %606 = vmatprep.mubr.msk.f32.mxu0 %vm752_vm0, %v751_v0  ;;  %v42_v4 = vmul.f32 %v806_v2, %v806_v2  ;;  %v497_v9 = vshrl.u32 %v496_v7, 7  ;;  %v47_v39 = vsel %vm43_vm1, %v806_v2, 0.0  ;;  %s566_s9 = sshll.u32 %s754_s1, 4  ;;  %s567_s9 = int_to_ptr.vmem [resolvable:$true] %s566_s9 }
  0x2a   :  { %610 = vmatpush3.xpose.msra.mxu1 %v40_v1  ;;  %605 = vmatpush3.xpose.msra.mxu0 %v40_v1  ;;  %s697_s10 = scalar_lea.vmem %s567_s9, 16  ;;  %s701_s11 = scalar_lea.vmem %s567_s9, 32 }
  0x2b   :  { %619 = vmatprep.subr.mxu1 %v751_v0  ;;  %614 = vmatprep.subr.mxu0 %v751_v0  ;;  %v44_v5 = vsel %vm43_vm1, %v42_v4, 0.0  ;;  %v824_v14 = vsub.s32 0, %v497_v9  ;;  %p698_p2 = scmp.ne.s32.totalorder %s567_s9, %s697_s10  ;;  %p702_p3 = scmp.lt.s32.totalorder %s567_s9, %s567_s9 }
  0x2c   :  { %45 = vadd.xlane.f32.xlu0 %v44_v5  ;;  %p703_p4 = scmp.lt.s32.totalorder %s701_s11, %s697_s10 }
  0x2d   :  { %612 = vmatmul.mubr.f32.vlgmr.msra.gmra.mrb[0].mxu1 %v806_v2  ;;  %607 = vmatmul.mubr.f32.vlgmr.msra.gmra.mrb[0].mxu0 %v40_v1 }
  0x2e   :  { %620 = vmatpush3.xpose.msra.mxu1 %v41_v3  ;;  %621 = vmatprep.mubr.msk.f32.mxu1 %vm752_vm0, %v751_v0  ;;  %p704_p5 = por %p703_p4, %p702_p3 }
  0x2f   :  { %615 = vmatpush3.xpose.msra.mxu0 %v40_v1  ;;  %616 = vmatprep.mubr.msk.f32.mxu0 %vm752_vm0, %v751_v0 }
  0x30   :  { %624 = vmatprep.subr.mxu0 %v751_v0  ;;  %629 = vmatprep.subr.mxu1 %v751_v0  ;;  %p705_p6 = pnand %p704_p5, %p698_p2 }
  0x31   :  { %622 = vmatmul.mubr.f32.vlgmr.msra.gmra.mrb[2].mxu1 %v753_v6  ;;  %50 = vadd.xlane.f32.xlu0 %v41_v3 }
  0x32   :  { %617 = vmatmul.mubr.f32.vlgmr.msra.gmra.mrb[2].mxu0 %v753_v6  ;;  %630 = vmatpush3.xpose.msra.mxu1 %v40_v1 }
  0x33   :  { %625 = vmatpush3.msra.mxu0 %v40_v1  ;;  %626 = vmatprep.mubr.msk.f32.mxu0 %vm752_vm0, %v751_v0 }
  0x34   :  { %631 = vmatprep.mubr.msk.f32.mxu1 %vm752_vm0, %v751_v0 }
  0xb9   :  { %v46_v8 = vpop.xlane.xlu0 %45 }
  0xba   :  { %v533_v45 = vrot.slane %v46_v8, %v824_v14 }
  0xbe   :  { %v51_v16 = vpop.xlane.xlu0 %50 }
 0x100   :  { %v188_v10 = vpop.f32.mrb[0].mxu1  ;;  %v118_v11 = vpop.f32.mrb[0].mxu0 }
 0x101   :  { %v613_v12 = vpop.f32.mrb[1].mxu1  ;;  %v608_v13 = vpop.f32.mrb[1].mxu0  ;;  %v528_v51 = vrot.slane %v188_v10, %v824_v14 }
 0x104   :  { %v328_v15 = vpop.f32.mrb[2].mxu1 }
 0x105   :  { %v332_v17 = vmul.f32 %v328_v15, %v46_v8  ;;  %v623_v18 = vpop.f32.mrb[3].mxu1  ;;  %v499_v19 = vrot.slane %v328_v15, %v824_v14  ;;  %v258_v20 = vpop.f32.mrb[2].mxu0  ;;  %v346_v24 = vmax.f32 %v328_v15, 1e-16 }
 0x106   :  { %v618_v21 = vpop.f32.mrb[3].mxu0  ;;  %v513_v34 = vrot.slane %v258_v20, %v824_v14 }
 0x107   :  { %v333_v22 = vmax.f32 %v332_v17, 1e-16  ;;  %v500_v23 = vmul.f32 %v499_v19, %v51_v16 }
 0x109   :  { %641 = vrsqrt.f32 %v333_v22  ;;  %v501_v25 = vmax.f32 %v500_v23, 1e-16 }
 0x10b   :  { %643 = vrsqrt.f32 %v501_v25 }
 0x10c   :  { %645 = vrsqrt.f32 %v346_v24 }
 0x113   :  { %v642_v26 = vpop.eup %641 }
 0x114   :  { %v335_v27 = vmul.f32 %v642_v26, %v188_v10 }
 0x115   :  { %v644_v28 = vpop.eup %643 }
 0x116   :  { %v503_v29 = vmul.f32 %v644_v28, %v118_v11  ;;  %v507_v30 = vrot.slane %v335_v27, %v824_v14  ;;  %vm336_vm3 = vcmp.gt.f32.partialorder %v335_v27, 0.3  ;;  %556 = vst.msk [vmem:[#allocation7] sm:$0x1] %vm339_vm2, %v335_v27  ;;  %v646_v31 = vpop.eup %645 }
 0x117   :  { %v590_v32 = vsel %vm336_vm3, 1.0, %v751_v0 }
 0x118   :  { %v508_v33 = vadd.f32 %v507_v30, %v503_v29  ;;  %v340_v35 = vsel %vm339_vm2, %v590_v32, 0.0  ;;  %v348_v36 = vmul.f32 %v646_v31, %v590_v32 }
 0x119   :  { %341 = vadd.xlane.f32.xlu1 %v340_v35 }
 0x11a   :  { %v509_v37 = vmul.f32 2.0, %v508_v33  ;;  %v516_v38 = vmul.f32 128.0, %v508_v33  ;;  %627 = vmatmul.mubr.msk.f32.vlgmr.msra.gmra.mrb[4].mxu0 %vm349_vm4, %v348_v36 }
 0x11c   :  { %v514_v40 = vmul.f32 %v513_v34, %v509_v37  ;;  %v517_v42 = vmul.f32 %v516_v38, %v508_v33 }
 0x11d   :  { %48 = vadd.xlane.f32.xlu1 %v47_v39 }
 0x11e   :  { %v515_v41 = vadd.f32 %v514_v40, %v499_v19 }
 0x120   :  { %v518_v43 = vadd.f32 %v517_v42, %v515_v41 }
 0x122   :  { %v519_v44 = vmax.f32 %v518_v43, 0.0 }
 0x124   :  { %v534_v46 = vmul.f32 %v533_v45, %v519_v44 }
 0x126   :  { %v535_v47 = vmax.f32 %v534_v46, 1e-16 }
 0x128   :  { %647 = vrsqrt.f32 %v535_v47 }
 0x132   :  { %v648_v54 = vpop.eup %647 }
 0x1a6   :  { %v342_v48 = vpop.xlane.xlu1 %341 }
 0x1aa   :  { %v49_v49 = vpop.xlane.xlu1 %48 }
 0x1ab   :  { %v523_v50 = vrot.slane %v49_v49, %v824_v14 }
 0x1ad   :  { %v524_v52 = vmul.f32 %v523_v50, %v508_v33 }
 0x1af   :  { %v529_v53 = vadd.f32 %v528_v51, %v524_v52 }
 0x1b1   :  { %v537_v55 = vmul.f32 %v648_v54, %v529_v53 }
 0x1b3   :  { %v557_v56 = vadd.f32 %v537_v55, %v508_v33 }
 0x1ed   :  { %v419_v57 = vpop.f32.mrb[4].mxu0 }
 0x1ee   :  { %v628_v58 = vpop.f32.mrb[5].mxu0  ;;  %632 = vmatmul.mubr.f32.vlgmr.msra.gmra.mrb[4].mxu1 %v419_v57  ;;  %v423_v59 = vsel %vm43_vm1, %v419_v57, 0.0 }
 0x1ef   :  { %424 = vadd.xlane.f32.xlu0 %v423_v59 }
 0x1f0   :  { %708 = shalt.err (!%p705_p6)
}
 0x1f1   :  { %s709_s14 = scalar_lea.hbm %s867_s2, 16 }
 0x1f2   :  { %p710_p7 = scmp.ne.s32.totalorder %s867_s2, %s709_s14  ;;  %p713_p8 = scmp.lt.u32.totalorder %s709_s14, %s867_s2 }
 0x1f4   :  { %p715_p9 = pnand %p713_p8, %p710_p7 }
 0x1f6   :  { %718 = shalt.err (!%p715_p9)
}
 0x1f7   :  { %569 = dma.vmem_to_hbm [thread:$0]  %s567_s9, 16, %s867_s2, [#allocation4]   ;;  %v343_v60 = vmax.f32 %v342_v48, 1.0  ;;  %v548_v61 = vmax.f32 %v519_v44, 1e-16 }
 0x1f8   :  { %s755_s21 = smov [#allocation8]  }
 0x1f9   :  { %649 = vrcp.f32 %v343_v60  ;;  %s576_s2 = sshll.u32 %s755_s21, 4  ;;  %s577_s2 = int_to_ptr.vmem [resolvable:$true] %s576_s2 }
 0x1fa   :  { %651 = vrsqrt.f32 %v548_v61  ;;  %s719_s22 = scalar_lea.vmem %s577_s2, 128  ;;  %p724_p11 = scmp.lt.s32.totalorder %s577_s2, %s577_s2 }
 0x1fb   :  { %p720_p10 = scmp.ne.s32.totalorder %s577_s2, %s719_s22  ;;  %p725_p12 = scmp.lt.s32.totalorder %s719_s22, %s719_s22 }
 0x1fd   :  { %p726_p13 = por %p725_p12, %p724_p11 }
 0x1ff   :  { %p727_p0 = pnand %p726_p13, %p720_p10 }
 0x203   :  { %v650_v4 = vpop.eup %649 }
 0x204   :  { %v652_v6 = vpop.eup %651  ;;  %v554_v8 = vrot.slane %v650_v4, %v824_v14 }
 0x27c   :  { %v425_v62 = vpop.xlane.xlu0 %424 }
 0x27d   :  { %v541_v63 = vrot.slane %v425_v62, %v824_v14 }
 0x27f   :  { %v542_v1 = vmul.f32 %v541_v63, %v508_v33 }
 0x2c1   :  { %v492_v0 = vpop.f32.mrb[4].mxu1 }
 0x2c2   :  { %v546_v2 = vrot.slane %v492_v0, %v824_v14  ;;  %v633_v3 = vpop.f32.mrb[5].mxu1 }
 0x2c4   :  { %v547_v5 = vadd.f32 %v546_v2, %v542_v1 }
 0x2c6   :  { %v550_v7 = vmul.f32 %v652_v6, %v547_v5 }
 0x2c8   :  { %v555_v9 = vmul.f32 %v554_v8, %v550_v7 }
 0x2ca   :  { %v558_v10 = vadd.f32 %v557_v56, %v555_v9 }
 0x2cc   :  { %559 = vst.msk [vmem:[#allocation8] sm:$0xff] %vm349_vm4, %v558_v10 }
 0x2cd   :  { %730 = shalt.err (!%p727_p0)
}
 0x2ce   :  { %s731_s25 = scalar_lea.hbm %s868_s3, 128 }
 0x2cf   :  { %p732_p1 = scmp.ne.s32.totalorder %s868_s3, %s731_s25  ;;  %p735_p2 = scmp.lt.u32.totalorder %s731_s25, %s868_s3 }
 0x2d1   :  { %p737_p3 = pnand %p735_p2, %p732_p1 }
 0x2d3   :  { %740 = shalt.err (!%p737_p3)
}
 0x2d4   :  { %579 = dma.vmem_to_hbm [thread:$0]  %s577_s2, 128, %s868_s3, [#allocation9]  }
 0x2d5   :  { %745 = dma.done.wait [#allocation4], 16  }
 0x2d6   :  { %746 = vsyncadd [#allocation4], 4294967280 }
 0x2d7   :  { %747 = dma.done.wait [#allocation9], 128  }
 0x2d8   :  { %748 = vsyncadd [#allocation9], 4294967168 }
 0x2d9   :  { %586 = vsyncpa [#allocation3], 1 }
 0x2da   :  { %587 = vsyncpa [#allocation6], 1 }
 0x2db   :  { %588 = vsyncpa [#allocation4], 1 }
 0x2dc   :  { %589 = vsyncpa [#allocation9], 1 }

</bundles_post_ra>
